<compile_context>
chip_gen: v5e
topology: v5e:2x2
jax: 0.10.0
libtpu: 0.0.40
codegen_flags: <defaults>
</compile_context>

<pallas_src>
import functools

import jax
import jax.numpy as jnp
from jax import lax
from jax.experimental import pallas as pl
from jax.experimental.pallas import tpu as pltpu


def _round_up(x, m):
    return ((x + m - 1) // m) * m


def _apply_activation(x, activation):
    if activation is None:
        return x
    if activation == "relu":
        return jnp.maximum(x, 0.0)
    if activation == "sigmoid":
        return jax.nn.sigmoid(x)
    if activation == "tanh":
        return jnp.tanh(x)
    raise ValueError(f"unknown activation: {activation!r}")


# ----------------------------- kernels -----------------------------


def _fwd_kernel_single_k(x_ref, w_ref, b_ref, o_ref, *, activation, scale):
    """Single-K-block path: no accumulator scratch, epilogue fused in."""
    # x_ref: (tm, K)  w_ref: (tn, K)  b_ref: (1, tn)  o_ref: (tm, tn)
    acc = lax.dot_general(
        x_ref[...], w_ref[...],
        dimension_numbers=(((1,), (1,)), ((), ())),   # NT matmul on the MXU
        preferred_element_type=jnp.float32)
    if scale != 1.0:                                   # dropout 1/(1-p), hoisted
        acc = acc * jnp.float32(scale)
    out = acc + b_ref[...].astype(jnp.float32)
    o_ref[...] = _apply_activation(out, activation).astype(o_ref.dtype)


def _fwd_kernel_split_k(x_ref, w_ref, b_ref, o_ref, acc_ref, *,
                        activation, scale):
    """(M, N, K) grid with a resident f32 VMEM accumulator along K."""
    k = pl.program_id(2)

    @pl.when(k == 0)
    def _():
        acc_ref[...] = jnp.zeros_like(acc_ref)

    acc_ref[...] += lax.dot_general(
        x_ref[...], w_ref[...],
        dimension_numbers=(((1,), (1,)), ((), ())),
        preferred_element_type=jnp.float32)

    @pl.when(k == pl.num_programs(2) - 1)
    def _():
        out = acc_ref[...]
        if scale != 1.0:
            out = out * jnp.float32(scale)
        out = out + b_ref[...].astype(jnp.float32)
        o_ref[...] = _apply_activation(out, activation).astype(o_ref.dtype)


# ----------------------------- wrapper -----------------------------


def _vmem_limit_bytes():
    """Generation-aware VMEM limit with headroom (v7x has only 64 MiB/TC)."""
    try:
        info = pltpu.get_tpu_info()
        cap = int(getattr(info, "vmem_capacity_bytes", 0))
        if cap < (16 << 20):
            return 48 * 1024 * 1024
        return min(int(cap * 0.8), 100 * 1024 * 1024)
    except Exception:
        return 48 * 1024 * 1024


def _vmem_estimate(tm, tn, tk, nk, in_bytes, out_bytes):
    """Rough double-buffered VMEM footprint of one tile configuration."""
    x_b = 2 * tm * tk * in_bytes
    w_b = 2 * tn * tk * in_bytes
    b_b = 2 * tn * 4
    o_b = 2 * tm * tn * out_bytes
    acc = tm * tn * 4 if nk > 1 else 0
    return x_b + w_b + b_b + o_b + acc


def network_forward(x, weight, bias, *, activation=None, dropout_p=0.0,
                    dropout_key=None, tm=512, tn=512, tk=1024,
                    compute_dtype=jnp.bfloat16, auto_tile=True):
    """Pallas equivalent of Network.forward.

    x:      [B, D_in]  float32
    weight: [H, D_in]  float32  (PyTorch nn.Linear layout -- not transposed)
    bias:   [H]        float32
    returns [B, H]     x.dtype
    """
    B, D_in = x.shape
    H, D_in_w = weight.shape
    assert D_in_w == D_in and bias.shape == (H,)
    out_dtype = x.dtype

    # ---- dropout (training semantics of nn.Dropout) ----
    # TODO(synk): the in-kernel pltpu.prng_* dropout was removed because those
    # primitives do not lower under interpret/CPU; the mask is drawn once here
    # (never recomputed per output tile) and the 1/(1-p) scale is folded into
    # the kernel epilogue.  PyTorch's RNG stream is not reproduced bit-exactly.
    p = float(dropout_p)
    scale = 1.0
    if p >= 1.0:
        x = jnp.zeros_like(x)                      # all dropped -> activation(bias)
    elif p > 0.0:
        key = dropout_key if dropout_key is not None else jax.random.PRNGKey(0)
        keep = jax.random.bernoulli(key, 1.0 - p, x.shape)
        x = jnp.where(keep, x, jnp.zeros_like(x))
        scale = 1.0 / (1.0 - p)

    # ---- bf16 MXU operands, f32 accumulation (precision tradeoff) ----
    x_c = x.astype(compute_dtype)
    w_c = weight.astype(compute_dtype)
    in_bytes = jnp.dtype(compute_dtype).itemsize
    out_bytes = jnp.dtype(out_dtype).itemsize

    # ---- tile selection ----
    B_a = _round_up(B, 8)
    H_a = _round_up(H, 128)
    D_a = _round_up(D_in, 128)
    tm = min(tm, B_a)
    tn = min(tn, H_a)
    tk = min(tk, D_a)

    vmem_limit = _vmem_limit_bytes()
    budget = max(vmem_limit - (8 << 20), 8 << 20)

    if auto_tile:
        # Preference order: (a) weight fully resident (single N/K block, weight
        # DMA'd once per call), (b) K collapsed (no accumulator RMW, epilogue
        # once per tile), (c) baseline tiles.
        candidates = [(tm, H_a, D_a), (tm, tn, D_a), (tm, tn, tk)]
        for ctm, ctn, ctk in candidates:
            cnk = _round_up(D_in, ctk) // ctk
            if _vmem_estimate(ctm, ctn, ctk, cnk, in_bytes, out_bytes) <= budget:
                tm, tn, tk = ctm, ctn, ctk
                break

    # v7x megacore guard: ensure at least one "parallel" axis has >= 2 blocks.
    if (_round_up(B, tm) // tm == 1 and _round_up(H, tn) // tn == 1
            and tn >= 256 and (tn // 2) % 128 == 0):
        tn //= 2

    B_p = _round_up(B, tm)
    H_p = _round_up(H, tn)
    D_p = _round_up(D_in, tk)
    nk = D_p // tk

    # Zero-padding is exact for the matmul; extra rows/cols are sliced off.
    # TODO(synk): for a real module, pad + bf16-cast the weight/bias once at
    # init instead of per forward call (under jit with static params it folds).
    x_p = x_c if (B_p == B and D_p == D_in) else jnp.pad(
        x_c, ((0, B_p - B), (0, D_p - D_in)))
    w_p = w_c if (H_p == H and D_p == D_in) else jnp.pad(
        w_c, ((0, H_p - H), (0, D_p - D_in)))
    b_p = bias.astype(jnp.float32)
    if H_p != H:
        b_p = jnp.pad(b_p, (0, H_p - H))
    b_p = b_p.reshape(1, H_p)

    grid_m, grid_n = B_p // tm, H_p // tn

    if nk == 1:
        kernel = functools.partial(_fwd_kernel_single_k,
                                   activation=activation, scale=scale)
        grid = (grid_m, grid_n)
        in_specs = [
            pl.BlockSpec((tm, tk), lambda i, j: (i, 0)),
            pl.BlockSpec((tn, tk), lambda i, j: (j, 0)),
            pl.BlockSpec((1, tn), lambda i, j: (0, j)),
        ]
        out_specs = pl.BlockSpec((tm, tn), lambda i, j: (i, j))
        scratch_shapes = []
        dims = ("parallel", "parallel")
    else:
        kernel = functools.partial(_fwd_kernel_split_k,
                                   activation=activation, scale=scale)
        grid = (grid_m, grid_n, nk)
        in_specs = [
            pl.BlockSpec((tm, tk), lambda i, j, k: (i, k)),
            pl.BlockSpec((tn, tk), lambda i, j, k: (j, k)),
            pl.BlockSpec((1, tn), lambda i, j, k: (0, j)),
        ]
        out_specs = pl.BlockSpec((tm, tn), lambda i, j, k: (i, j))
        scratch_shapes = [pltpu.VMEM((tm, tn), jnp.float32)]
        dims = ("parallel", "parallel", "arbitrary")

    flops = 2 * B_p * D_p * H_p
    transcendentals = B_p * H_p if activation in ("sigmoid", "tanh") else 0
    # Actual re-streaming: x is read once per N block, weight/bias once per
    # M block.
    bytes_accessed = (x_p.size * in_bytes * grid_n
                      + w_p.size * in_bytes * grid_m
                      + b_p.size * 4 * grid_m
                      + B_p * H_p * out_bytes)

    out_p = pl.pallas_call(
        kernel,
        out_shape=jax.ShapeDtypeStruct((B_p, H_p), out_dtype),
        grid_spec=pltpu.PrefetchScalarGridSpec(
            num_scalar_prefetch=0,
            grid=grid,
            in_specs=in_specs,
            out_specs=out_specs,
            scratch_shapes=scratch_shapes),
        compiler_params=pltpu.CompilerParams(
            dimension_semantics=dims,
            vmem_limit_bytes=vmem_limit),
        cost_estimate=pl.CostEstimate(
            flops=flops, transcendentals=transcendentals,
            bytes_accessed=bytes_accessed),
    )(x_p, w_p, b_p)

    if B_p != B or H_p != H:
        out_p = out_p[:B, :H]
    return out_p


def _reference(x, weight, bias, activation):
    return _apply_activation(x @ weight.T + bias, activation)


if __name__ == "__main__":
    key = jax.random.PRNGKey(0)
    k_x, k_w, k_b, k_x2, k_w2, k_b2, k_do = jax.random.split(key, 7)

    # Small shapes consistent with the module (one Linear layer).
    batch, input_size, hidden_size = 8, 32, 32
    x = jax.random.normal(k_x, (batch, input_size), dtype=jnp.float32)
    bound = 1.0 / (input_size ** 0.5)
    weight = jax.random.uniform(k_w, (hidden_size, input_size),
                                minval=-bound, maxval=bound, dtype=jnp.float32)
    bias = jax.random.uniform(k_b, (hidden_size,),
                              minval=-bound, maxval=bound, dtype=jnp.float32)

    # 1) eval / dropout=0 path (module default): matches the f32 reference to
    #    bf16-matmul tolerance.
    out = jax.block_until_ready(
        network_forward(x, weight, bias, activation="relu", dropout_p=0.0))
    ref = _reference(x, weight, bias, "relu")
    assert out.shape == (batch, hidden_size)
    assert jnp.allclose(out, ref, atol=2e-2, rtol=2e-2), "relu path mismatch"

    # 2) training-mode dropout smoke test.
    out_do = jax.block_until_ready(
        network_forward(x, weight, bias, activation="tanh",
                        dropout_p=0.5, dropout_key=k_do))
    assert out_do.shape == (batch, hidden_size)
    assert bool(jnp.all(jnp.isfinite(out_do)))

    # 3) dropout_p == 1.0 degenerate case: out == activation(bias) == bias.
    out_p1 = jax.block_until_ready(
        network_forward(x, weight, bias, activation=None, dropout_p=1.0))
    assert jnp.allclose(out_p1, jnp.broadcast_to(bias, (batch, hidden_size)),
                        atol=1e-5, rtol=1e-5), "dropout=1 path mismatch"

    # 4) split-K accumulator path (explicit small tiles, auto_tile off).
    b2, d2, h2 = 16, 256, 128
    x2 = jax.random.normal(k_x2, (b2, d2), dtype=jnp.float32)
    bound2 = 1.0 / (d2 ** 0.5)
    w2 = jax.random.uniform(k_w2, (h2, d2), minval=-bound2, maxval=bound2,
                            dtype=jnp.float32)
    bvec2 = jax.random.uniform(k_b2, (h2,), minval=-bound2, maxval=bound2,
                               dtype=jnp.float32)
    out2 = jax.block_until_ready(
        network_forward(x2, w2, bvec2, activation="sigmoid", dropout_p=0.0,
                        tm=16, tn=128, tk=128, auto_tile=False))
    ref2 = _reference(x2, w2, bvec2, "sigmoid")
    assert out2.shape == (b2, h2)
    assert jnp.allclose(out2, ref2, atol=2e-2, rtol=2e-2), "split-K mismatch"

    print("KERNEL_OK")
</pallas_src>

<mosaic_0001>
module attributes {stable_mosaic.version = 11 : i64} {
  func.func @_fwd_kernel_single_k(%arg0: i32, %arg1: i32, %arg2: memref<8x128xbf16, #tpu.memory_space<vmem>>, %arg3: memref<128x128xbf16, #tpu.memory_space<vmem>>, %arg4: memref<1x128xf32, #tpu.memory_space<vmem>>, %arg5: memref<8x128xf32, #tpu.memory_space<vmem>>) attributes {dimension_semantics = [#tpu.dimension_semantics<parallel>, #tpu.dimension_semantics<parallel>], iteration_bounds = array<i64: 1, 1>, scalar_prefetch = 0 : i64, scratch_operands = 0 : i64, tpu.core_type = #tpu.core_type<tc>, window_params = [{transform_indices = @transform_0, window_bounds = array<i64: 8, 128>}, {transform_indices = @transform_1, window_bounds = array<i64: 128, 128>}, {transform_indices = @transform_2, window_bounds = array<i64: 1, 128>}, {transform_indices = @transform_3, window_bounds = array<i64: 8, 128>}]} {
    %c0 = arith.constant 0 : index
    %c0_0 = arith.constant 0 : index
    %0 = vector.load %arg2[%c0, %c0_0] : memref<8x128xbf16, #tpu.memory_space<vmem>>, vector<8x128xbf16>
    %c0_1 = arith.constant 0 : index
    %c0_2 = arith.constant 0 : index
    %1 = vector.load %arg3[%c0_1, %c0_2] : memref<128x128xbf16, #tpu.memory_space<vmem>>, vector<128x128xbf16>
    %cst = arith.constant dense<0.000000e+00> : vector<8x128xf32>
    %2 = tpu.matmul %0, %1, %cst {dimension_numbers = #tpu.dot_dimension_numbers<[1], [1], [0], [0], [0, 0, 1, 0], [], []>} : vector<8x128xbf16>, vector<128x128xbf16>, vector<8x128xf32> -> vector<8x128xf32>
    %c0_3 = arith.constant 0 : index
    %c0_4 = arith.constant 0 : index
    %3 = vector.load %arg4[%c0_3, %c0_4] : memref<1x128xf32, #tpu.memory_space<vmem>>, vector<1x128xf32>
    %4 = vector.broadcast %3 : vector<1x128xf32> to vector<8x128xf32>
    %5 = arith.addf %2, %4 : vector<8x128xf32>
    %cst_5 = arith.constant 0.000000e+00 : f32
    %6 = vector.broadcast %cst_5 : f32 to vector<8x128xf32>
    %7 = arith.maximumf %5, %6 : vector<8x128xf32>
    %c0_6 = arith.constant 0 : index
    %c0_7 = arith.constant 0 : index
    %8 = vector.load %arg5[%c0_6, %c0_7] : memref<8x128xf32, #tpu.memory_space<vmem>>, vector<8x128xf32>
    tpu.vector_store %arg5[%c0_6, %c0_7], %7 {strides = array<i32>} : memref<8x128xf32, #tpu.memory_space<vmem>>, vector<8x128xf32>,
    return
  }
  func.func @transform_0(%arg0: i32, %arg1: i32) -> (i32, i32) {
    %c0_i32 = arith.constant 0 : i32
    %c0_i32_0 = arith.constant 0 : i32
    return %arg0, %c0_i32 : i32, i32
  }
  func.func @transform_1(%arg0: i32, %arg1: i32) -> (i32, i32) {
    %c0_i32 = arith.constant 0 : i32
    %c0_i32_0 = arith.constant 0 : i32
    return %arg1, %c0_i32 : i32, i32
  }
  func.func @transform_2(%arg0: i32, %arg1: i32) -> (i32, i32) {
    %c0_i32 = arith.constant 0 : i32
    %c0_i32_0 = arith.constant 0 : i32
    return %c0_i32, %arg1 : i32, i32
  }
  func.func @transform_3(%arg0: i32, %arg1: i32) -> (i32, i32) {
    %c0_i32 = arith.constant 0 : i32
    return %arg0, %arg1 : i32, i32
  }
}

</mosaic_0001>

<bundles_post_ra>
// kernel: tpu_custom_call.1
= control target key start
LH: loop header
LB: loop body
LE: loop exit
PB: predicated region body
PF: predicated region fallthrough
CT: control target
= control target key end

     0   :  { %8 = vsyncpa [#allocation3], 0  ;;  %s308_s0 = inlined_call_operand.hbm [shape: bf16[8,128], index: 0, kind: input, shape index: {}]   ;;  %s309_s1 = inlined_call_operand.hbm [shape: bf16[128,128], index: 1, kind: input, shape index: {}]   ;;  %s310_s2 = inlined_call_operand.vmem [shape: f32[1,128], index: 2, kind: input, shape index: {}]   ;;  %s311_s3 = inlined_call_operand.hbm [shape: f32[8,128], index: 3, kind: output, shape index: {}]  }
   0x1   :  { %9 = vsyncpa [#allocation6], 0 }
   0x2   :  { %10 = vsyncpa [#allocation4], 0  ;;  %s16_s14 = sshll.u32 %s308_s0, 4  ;;  %s271_s15 = smov [#allocation2]   ;;  %s17_s14 = int_to_ptr.hbm [resolvable:$true] %s16_s14 }
   0x3   :  { %s18_s16 = sshll.u32 %s271_s15, 4  ;;  %s26_s19 = sshll.u32 %s309_s1, 4  ;;  %s19_s16 = int_to_ptr.vmem [resolvable:$true] %s18_s16  ;;  %s27_s19 = int_to_ptr.hbm [resolvable:$true] %s26_s19 }
   0x4   :  { %21 = dma.hbm_to_vmem [thread:$0]  %s17_s14, 64, %s19_s16, [#allocation3]  }
   0x5   :  { %s272_s20 = smov [#allocation5]   ;;  %s273_s22 = smov 64  }
   0x6   :  { %s28_s21 = sshll.u32 %s272_s20, 4  ;;  %s274_s23 = smov 4   ;;  %s29_s21 = int_to_ptr.vmem [resolvable:$true] %s28_s21 }
   0x7   :  { %34 = dma.hbm_to_vmem [thread:$0]  %s27_s19, 1024, %s29_s21, [#allocation6], %s273_s22, %s273_s22, %s274_s23  }
   0x8   :  { %265 = dma.done.wait [#allocation3], 64  }
   0x9   :  { %266 = vsyncadd [#allocation3], 4294967232 }
   0xa   :  { %267 = dma.done.wait [#allocation6], 1024  }
   0xb   :  { %268 = vsyncadd [#allocation6], 4294966272  ;;  %v186_v0 = vld [vmem:[#allocation5 + $0x38] sm:$0xff]  ;;  %v185_v1 = vld [vmem:[#allocation5 + $0x30] sm:$0xff]  ;;  %s275_s24 = smov [#allocation7]   ;;  %s136_s28 = sshll.u32 %s311_s3, 4  ;;  %s137_s28 = int_to_ptr.hbm [resolvable:$true] %s136_s28 }
   0xc   :  { %114 = vmatpush.bf16.xpose.msra.mxu0 %v186_v0  ;;  %v184_v2 = vld [vmem:[#allocation5 + $0x28] sm:$0xff]  ;;  %v183_v3 = vld [vmem:[#allocation5 + $0x20] sm:$0xff]  ;;  %v182_v4 = vld [vmem:[#allocation5 + $0x18] sm:$0xff]  ;;  %s134_s25 = sshll.u32 %s275_s24, 4  ;;  %s135_s25 = int_to_ptr.vmem [resolvable:$true] %s134_s25 }
   0xd   :  { %v181_v5 = vld [vmem:[#allocation5 + $0x10] sm:$0xff]  ;;  %v180_v6 = vld [vmem:[#allocation5 + $0x8] sm:$0xff]  ;;  %v179_v7 = vld [vmem:[#allocation5] sm:$0xff] }
   0xe   :  { %v45_v8 = vld [vmem:[#allocation2] sm:$0xf] }
   0xf   :  { %v192_v9 = vld [vmem:[%s310_s2] ss:$0 sm:$0xff] }
  0x14   :  { %115 = vmatpush.bf16.xpose.msra.mxu0 %v185_v1 }
  0x1c   :  { %116 = vmatpush.bf16.xpose.msra.mxu0 %v184_v2 }
  0x24   :  { %117 = vmatpush.bf16.xpose.msra.mxu0 %v183_v3 }
  0x2c   :  { %118 = vmatpush.bf16.xpose.msra.mxu0 %v182_v4 }
  0x34   :  { %119 = vmatpush.bf16.xpose.msra.mxu0 %v181_v5 }
  0x3c   :  { %120 = vmatpush.bf16.xpose.msra.mxu0 %v180_v6 }
  0x44   :  { %121 = vmatpush.bf16.xpose.msra.mxu0 %v179_v7 }
  0x4b   :  { %122 = vmatmul.bf16.vlgmr.msra.gmra.mxu0 %v45_v8 }
  0xc8   :  { %v123_v10 = vpop.f32.mrf.mxu0 }
  0xc9   :  { %v124_v11 = vadd.f32 %v192_v9, %v123_v10 }
  0xcb   :  { %v127_v12 = vmax.f32 %v124_v11, 0.0 }
  0xcd   :  { %128 = vst [vmem:[#allocation7] sm:$0xff] %v127_v12 }
  0xce   :  { %139 = dma.vmem_to_hbm [thread:$0]  %s135_s25, 128, %s137_s28, [#allocation4]  }
  0xd0   :  { %v125_v13 = vpop.f32.mrf.mxu0 }
  0xd1   :  { %269 = dma.done.wait [#allocation4], 128  }
  0xd2   :  { %270 = vsyncadd [#allocation4], 4294967168 }
  0xd3   :  { %144 = vsyncpa [#allocation3], 1 }
  0xd4   :  { %145 = vsyncpa [#allocation6], 1 }
  0xd5   :  { %146 = vsyncpa [#allocation4], 1 }

</bundles_post_ra>
